<compile_context>
chip_gen: v7x
topology: tpu7x:2x2x1
jax: 0.10.0
libtpu: 0.0.40
codegen_flags: <defaults>
</compile_context>

<pallas_src>
import jax
import jax.numpy as jnp
from jax.experimental import pallas as pl
from jax.experimental.pallas import tpu as pltpu


def _keyword_attn_kernel(bias_ref,     # SMEM (2,)  -> [b_s, b_b] (scalar prefetch)
                         h_ref,        # VMEM (bB, H)     native dtype
                         bert_ref,     # VMEM (bB, T, E)  native dtype (bf16 ok)
                         cov_ref,      # VMEM (bB, T)
                         ws_ref,       # VMEM (1, H)
                         wb_ref,       # VMEM (1, E)
                         attn_ref,     # VMEM (bB, T)    out, f32
                         cov_out_ref,  # VMEM (bB, T)    out, f32
                         loss_ref):    # VMEM (1, 1, 1)  out, f32 per-block partial
    b_s = bias_ref[0]
    b_b = bias_ref[1]

    h = h_ref[...].astype(jnp.float32)          # (bB, H)
    ws = ws_ref[...].astype(jnp.float32)        # (1, H)
    wb = wb_ref[...].astype(jnp.float32)        # (1, E)
    cov = cov_ref[...].astype(jnp.float32)      # (bB, T)
    # bert is read from HBM at its native width and widened on the fly (f32 math
    # is portable across v5e/v6e/v7x; v5e has no bf16 VPU/EUP).
    bert = bert_ref[...].astype(jnp.float32)    # (bB, T, E)

    # Linear_s over the (repeated) hidden state: identical for every time step,
    # so a single [bB,H].[H] -> [bB,1] contraction, broadcast over T below.
    s = jnp.sum(h * ws, axis=-1, keepdims=True) + b_s             # (bB, 1)

    # Linear_b: contract E (the lane axis).  Mosaic lowers this as VPU
    # multiply-accumulate across the E vregs plus one cross-lane reduce per row.
    # TODO(synk): revisit an MXU dot formulation (reshape (bB*T,E) @ (E,1)) once
    # the (N,1)->(bB,T) relayout is validated; with native-width DMA the kernel
    # is memory-bound at production sizes either way.
    b_proj = jnp.sum(bert * wb[None, :, :], axis=-1) + b_b        # (bB, T)

    logits = jnp.tanh(s + b_proj + cov)                           # (bB, T)

    # softmax over the keyword/time axis (torch dim=1 == lane axis here)
    m = jnp.max(logits, axis=-1, keepdims=True)
    e = jnp.exp(logits - m)
    denom = jnp.sum(e, axis=-1, keepdims=True)
    attn = e * pl.reciprocal(denom, approx=True)                  # (bB, T)

    cov_new = cov + attn

    attn_ref[...] = attn
    cov_out_ref[...] = cov_new
    # Per-block partial coverage loss; summed in the wrapper so the batch grid
    # axis can stay "parallel" (no cross-step accumulator).
    partial = jnp.sum(jnp.minimum(attn, cov_new)).astype(jnp.float32)
    loss_ref[...] = jnp.broadcast_to(partial, (1, 1, 1))


def _pick_block_b(B, T, E, itemsize, budget_bytes):
    """Largest batch block that (a) divides B, (b) keeps the bert tile within
    budget, and (c) satisfies TPU sublane tiling for the 2-D operands
    (block_b == B or block_b % 8 == 0)."""
    per_row = T * E * itemsize
    if B * per_row <= budget_bytes:
        return B
    candidates = [d for d in range(8, B, 8) if B % d == 0]
    fitting = [d for d in candidates if d * per_row <= budget_bytes]
    if fitting:
        return max(fitting)
    if candidates:
        return min(candidates)   # still bounds VMEM as tightly as the rule allows
    return B


def keyword_attention_distribution(current_hidden_state, bert_inputs, coverage,
                                   w_s, b_s, w_b, b_b, *,
                                   block_b=None,
                                   bert_block_budget_bytes=4 * 1024 * 1024):
    """current_hidden_state: [B,1,H], bert_inputs: [B,T,E] (any float dtype),
    coverage: [B,T,1].  Returns (attn [B,T] f32, new_coverage [B,T,1] f32, loss f32)."""
    B, _, H = current_hidden_state.shape
    _, T, E = bert_inputs.shape
    assert H == E, "hidden_size must equal embedding_size"

    # Only the small per-batch operands are reshaped here; the big bert tensor
    # goes into the kernel untouched (no extra HBM pass).
    h2d = current_hidden_state.reshape(B, H)
    cov2d = coverage.reshape(B, T)
    ws2d = jnp.asarray(w_s).reshape(1, H)
    wb2d = jnp.asarray(w_b).reshape(1, E)
    biases = jnp.stack([jnp.reshape(b_s, ()), jnp.reshape(b_b, ())]).astype(jnp.float32)

    itemsize = bert_inputs.dtype.itemsize
    if block_b is None:
        block_b = _pick_block_b(B, T, E, itemsize, bert_block_budget_bytes)
    assert B % block_b == 0, "block_b must divide the batch size"
    assert block_b == B or block_b % 8 == 0, \
        "block_b must equal B or be a multiple of 8 (TPU sublane tiling)"
    nblk = B // block_b

    # Double-buffered native-width bert tile + in-kernel f32 widening + outputs.
    # Keep comfortably under v7x's 64 MiB physical VMEM, but above v5e's 16 MiB
    # scoped default so buffering depth is never throttled.
    bert_block_bytes = block_b * T * E * itemsize
    vmem_limit = int(min(60 * 2**20, max(16 * 2**20, 8 * bert_block_bytes + (2 << 20))))

    grid_spec = pltpu.PrefetchScalarGridSpec(
        num_scalar_prefetch=1,              # [b_s, b_b] land in SMEM
        grid=(nblk,),
        in_specs=[
            pl.BlockSpec((block_b, H), lambda i, bias: (i, 0)),
            pl.BlockSpec((block_b, T, E), lambda i, bias: (i, 0, 0)),
            pl.BlockSpec((block_b, T), lambda i, bias: (i, 0)),
            pl.BlockSpec((1, H), lambda i, bias: (0, 0)),
            pl.BlockSpec((1, E), lambda i, bias: (0, 0)),
        ],
        out_specs=[
            pl.BlockSpec((block_b, T), lambda i, bias: (i, 0)),
            pl.BlockSpec((block_b, T), lambda i, bias: (i, 0)),
            pl.BlockSpec((1, 1, 1), lambda i, bias: (i, 0, 0)),
        ],
    )

    attn, cov_new, loss_parts = pl.pallas_call(
        _keyword_attn_kernel,
        grid_spec=grid_spec,
        out_shape=(
            jax.ShapeDtypeStruct((B, T), jnp.float32),
            jax.ShapeDtypeStruct((B, T), jnp.float32),
            jax.ShapeDtypeStruct((nblk, 1, 1), jnp.float32),
        ),
        compiler_params=pltpu.CompilerParams(
            dimension_semantics=("parallel",),   # megacore-shardable on v7x
            vmem_limit_bytes=vmem_limit,
        ),
    )(biases, h2d, bert_inputs, cov2d, ws2d, wb2d)

    loss = jnp.sum(loss_parts)                   # a handful of f32 partials
    return attn, cov_new.reshape(B, T, 1), loss


def _reference(h, bert, cov, w_s, b_s, w_b, b_b):
    """Pure-JAX transcription of the PyTorch forward for verification."""
    T = bert.shape[1]
    h = h.astype(jnp.float32)
    bert = bert.astype(jnp.float32)
    cov = cov.astype(jnp.float32)
    multi = jnp.repeat(h, T, axis=1)                  # [B,T,H]
    s = multi @ w_s.T + b_s                           # [B,T,1]
    bp = bert @ w_b.T + b_b                           # [B,T,1]
    attn = jnp.tanh(s + bp + cov)
    attn = jax.nn.softmax(attn, axis=1)
    cov_new = cov + attn
    loss = jnp.sum(jnp.minimum(attn, cov_new)).astype(jnp.float32)
    return attn.squeeze(2), cov_new, loss


if __name__ == "__main__":
    key = jax.random.PRNGKey(0)
    k1, k2, k3, k4, k5, k6, k7, k8, k9, k10 = jax.random.split(key, 10)

    H = 32
    E = H  # module asserts hidden_size == embedding_size

    # nn.Linear(in_features=H, out_features=1): weight [1,H], bias [1]
    w_s = jax.random.normal(k1, (1, H), jnp.float32) * 0.1
    b_s = jax.random.normal(k2, (1,), jnp.float32) * 0.1
    w_b = jax.random.normal(k3, (1, E), jnp.float32) * 0.1
    b_b = jax.random.normal(k4, (1,), jnp.float32) * 0.1

    # --- case 1: small single-block grid (block_b == B) ----------------------
    B, T = 2, 8
    hidden = jax.random.normal(k5, (B, 1, H), jnp.float32)
    bert = jax.random.normal(k6, (B, T, E), jnp.float32)
    coverage = jnp.abs(jax.random.normal(k7, (B, T, 1), jnp.float32)) * 0.1

    attn, cov_new, loss = keyword_attention_distribution(
        hidden, bert, coverage, w_s, b_s, w_b, b_b)
    jax.block_until_ready((attn, cov_new, loss))

    attn_r, cov_r, loss_r = _reference(hidden, bert, coverage, w_s, b_s, w_b, b_b)
    assert attn.shape == (B, T)
    assert cov_new.shape == (B, T, 1)
    assert loss.shape == ()
    assert jnp.allclose(attn, attn_r, rtol=5e-3, atol=5e-3)
    assert jnp.allclose(cov_new, cov_r, rtol=5e-3, atol=5e-3)
    assert jnp.allclose(loss, loss_r, rtol=1e-2, atol=1e-2)

    # --- case 2: multi-block pipelined grid, bf16 bert, "parallel" batch -----
    B2, T2 = 16, 8
    hidden2 = jax.random.normal(k8, (B2, 1, H), jnp.float32)
    bert2 = jax.random.normal(k9, (B2, T2, E), jnp.float32).astype(jnp.bfloat16)
    coverage2 = jnp.abs(jax.random.normal(k10, (B2, T2, 1), jnp.float32)) * 0.1

    attn2, cov_new2, loss2 = keyword_attention_distribution(
        hidden2, bert2, coverage2, w_s, b_s, w_b, b_b, block_b=8)  # grid=(2,)
    jax.block_until_ready((attn2, cov_new2, loss2))

    attn2_r, cov2_r, loss2_r = _reference(
        hidden2, bert2.astype(jnp.float32), coverage2, w_s, b_s, w_b, b_b)
    assert attn2.shape == (B2, T2)
    assert cov_new2.shape == (B2, T2, 1)
    assert jnp.allclose(attn2, attn2_r, rtol=5e-3, atol=5e-3)
    assert jnp.allclose(cov_new2, cov2_r, rtol=5e-3, atol=5e-3)
    assert jnp.allclose(loss2, loss2_r, rtol=1e-2, atol=1e-2)

    print("KERNEL_OK")
</pallas_src>

<mosaic_0001>
module attributes {stable_mosaic.version = 11 : i64} {
  func.func @_keyword_attn_kernel(%arg0: i32, %arg1: memref<2xf32, #tpu.memory_space<smem>>, %arg2: memref<2x32xf32, #tpu.memory_space<vmem>>, %arg3: memref<2x8x32xf32, #tpu.memory_space<vmem>>, %arg4: memref<2x8xf32, #tpu.memory_space<vmem>>, %arg5: memref<1x32xf32, #tpu.memory_space<vmem>>, %arg6: memref<1x32xf32, #tpu.memory_space<vmem>>, %arg7: memref<2x8xf32, #tpu.memory_space<vmem>>, %arg8: memref<2x8xf32, #tpu.memory_space<vmem>>, %arg9: memref<1x1x1xf32, #tpu.memory_space<vmem>>) attributes {dimension_semantics = [#tpu.dimension_semantics<parallel>], iteration_bounds = array<i64: 1>, scalar_prefetch = 1 : i64, scratch_operands = 0 : i64, tpu.core_type = #tpu.core_type<tc>, window_params = [{transform_indices = @transform_0, window_bounds = array<i64: 2, 32>}, {transform_indices = @transform_1, window_bounds = array<i64: 2, 8, 32>}, {transform_indices = @transform_2, window_bounds = array<i64: 2, 8>}, {pipeline_mode = #tpu.pipeline_mode<synchronous>, transform_indices = @transform_3, window_bounds = array<i64: 1, 32>}, {pipeline_mode = #tpu.pipeline_mode<synchronous>, transform_indices = @transform_4, window_bounds = array<i64: 1, 32>}, {transform_indices = @transform_5, window_bounds = array<i64: 2, 8>}, {transform_indices = @transform_6, window_bounds = array<i64: 2, 8>}, {transform_indices = @transform_7, window_bounds = array<i64: 1, 1, 1>}]} {
    %c0 = arith.constant 0 : index
    %0 = memref.load %arg1[%c0] : memref<2xf32, #tpu.memory_space<smem>>
    %c1 = arith.constant 1 : index
    %1 = memref.load %arg1[%c1] : memref<2xf32, #tpu.memory_space<smem>>
    %c0_0 = arith.constant 0 : index
    %c0_1 = arith.constant 0 : index
    %2 = vector.load %arg2[%c0_0, %c0_1] : memref<2x32xf32, #tpu.memory_space<vmem>>, vector<2x32xf32>
    %c0_2 = arith.constant 0 : index
    %c0_3 = arith.constant 0 : index
    %3 = vector.load %arg5[%c0_2, %c0_3] : memref<1x32xf32, #tpu.memory_space<vmem>>, vector<1x32xf32>
    %c0_4 = arith.constant 0 : index
    %c0_5 = arith.constant 0 : index
    %4 = vector.load %arg6[%c0_4, %c0_5] : memref<1x32xf32, #tpu.memory_space<vmem>>, vector<1x32xf32>
    %c0_6 = arith.constant 0 : index
    %c0_7 = arith.constant 0 : index
    %5 = vector.load %arg4[%c0_6, %c0_7] : memref<2x8xf32, #tpu.memory_space<vmem>>, vector<2x8xf32>
    %c0_8 = arith.constant 0 : index
    %c0_9 = arith.constant 0 : index
    %c0_10 = arith.constant 0 : index
    %6 = vector.load %arg3[%c0_8, %c0_9, %c0_10] : memref<2x8x32xf32, #tpu.memory_space<vmem>>, vector<2x8x32xf32>
    %7 = vector.broadcast %3 : vector<1x32xf32> to vector<2x32xf32>
    %8 = arith.mulf %2, %7 : vector<2x32xf32>
    %cst = arith.constant dense<0.000000e+00> : vector<2xf32>
    %9 = vector.multi_reduction <add>, %8, %cst [1] : vector<2x32xf32> to vector<2xf32>
    %10 = vector.shape_cast %9 : vector<2xf32> to vector<2x1xf32>
    %11 = vector.broadcast %0 : f32 to vector<2x1xf32>
    %12 = arith.addf %10, %11 : vector<2x1xf32>
    %13 = vector.shape_cast %4 : vector<1x32xf32> to vector<1x1x32xf32>
    %14 = vector.broadcast %13 : vector<1x1x32xf32> to vector<2x8x32xf32>
    %15 = arith.mulf %6, %14 : vector<2x8x32xf32>
    %cst_11 = arith.constant dense<0.000000e+00> : vector<2x8xf32>
    %16 = vector.multi_reduction <add>, %15, %cst_11 [2] : vector<2x8x32xf32> to vector<2x8xf32>
    %17 = vector.broadcast %1 : f32 to vector<2x8xf32>
    %18 = arith.addf %16, %17 : vector<2x8xf32>
    %19 = vector.broadcast %12 : vector<2x1xf32> to vector<2x8xf32>
    %20 = arith.addf %19, %18 : vector<2x8xf32>
    %21 = arith.addf %20, %5 : vector<2x8xf32>
    %22 = math.tanh %21 : vector<2x8xf32>
    %cst_12 = arith.constant dense<0xFF800000> : vector<2xf32>
    %23 = vector.multi_reduction <maximumf>, %22, %cst_12 [1] : vector<2x8xf32> to vector<2xf32>
    %24 = vector.shape_cast %23 : vector<2xf32> to vector<2x1xf32>
    %25 = vector.broadcast %24 : vector<2x1xf32> to vector<2x8xf32>
    %26 = arith.subf %22, %25 : vector<2x8xf32>
    %27 = math.exp %26 : vector<2x8xf32>
    %cst_13 = arith.constant dense<0.000000e+00> : vector<2xf32>
    %28 = vector.multi_reduction <add>, %27, %cst_13 [1] : vector<2x8xf32> to vector<2xf32>
    %29 = vector.shape_cast %28 : vector<2xf32> to vector<2x1xf32>
    %30 = tpu.reciprocal %29 {approx = true} : vector<2x1xf32> -> vector<2x1xf32>
    %31 = vector.broadcast %30 : vector<2x1xf32> to vector<2x8xf32>
    %32 = arith.mulf %27, %31 : vector<2x8xf32>
    %33 = arith.addf %5, %32 : vector<2x8xf32>
    %c0_14 = arith.constant 0 : index
    %c0_15 = arith.constant 0 : index
    %34 = vector.load %arg7[%c0_14, %c0_15] : memref<2x8xf32, #tpu.memory_space<vmem>>, vector<2x8xf32>
    tpu.vector_store %arg7[%c0_14, %c0_15], %32 {strides = array<i32>} : memref<2x8xf32, #tpu.memory_space<vmem>>, vector<2x8xf32>,
    %c0_16 = arith.constant 0 : index
    %c0_17 = arith.constant 0 : index
    %35 = vector.load %arg8[%c0_16, %c0_17] : memref<2x8xf32, #tpu.memory_space<vmem>>, vector<2x8xf32>
    tpu.vector_store %arg8[%c0_16, %c0_17], %33 {strides = array<i32>} : memref<2x8xf32, #tpu.memory_space<vmem>>, vector<2x8xf32>,
    %36 = arith.minimumf %32, %33 : vector<2x8xf32>
    %37 = vector.shape_cast %36 : vector<2x8xf32> to vector<1x2x8xf32>
    %cst_18 = arith.constant dense<0.000000e+00> : vector<1xf32>
    %38 = vector.multi_reduction <add>, %37, %cst_18 [1, 2] : vector<1x2x8xf32> to vector<1xf32>
    %39 = vector.shape_cast %38 : vector<1xf32> to vector<1x1x1xf32>
    %40 = vector.extract %39[0, 0, 0] : f32 from vector<1x1x1xf32>
    %41 = vector.broadcast %40 : f32 to vector<1x1x1xf32>
    %c0_19 = arith.constant 0 : index
    %c0_20 = arith.constant 0 : index
    %c0_21 = arith.constant 0 : index
    %42 = vector.load %arg9[%c0_19, %c0_20, %c0_21] : memref<1x1x1xf32, #tpu.memory_space<vmem>>, vector<1x1x1xf32>
    tpu.vector_store %arg9[%c0_19, %c0_20, %c0_21], %41 {strides = array<i32>} : memref<1x1x1xf32, #tpu.memory_space<vmem>>, vector<1x1x1xf32>,
    return
  }
  func.func @transform_0(%arg0: i32, %arg1: memref<2xf32, #tpu.memory_space<smem>>) -> (i32, i32) {
    %c0_i32 = arith.constant 0 : i32
    %c0_i32_0 = arith.constant 0 : i32
    return %arg0, %c0_i32 : i32, i32
  }
  func.func @transform_1(%arg0: i32, %arg1: memref<2xf32, #tpu.memory_space<smem>>) -> (i32, i32, i32) {
    %c0_i32 = arith.constant 0 : i32
    %c0_i32_0 = arith.constant 0 : i32
    %c0_i32_1 = arith.constant 0 : i32
    return %arg0, %c0_i32, %c0_i32_0 : i32, i32, i32
  }
  func.func @transform_2(%arg0: i32, %arg1: memref<2xf32, #tpu.memory_space<smem>>) -> (i32, i32) {
    %c0_i32 = arith.constant 0 : i32
    %c0_i32_0 = arith.constant 0 : i32
    return %arg0, %c0_i32 : i32, i32
  }
  func.func @transform_3(%arg0: i32, %arg1: memref<2xf32, #tpu.memory_space<smem>>) -> (i32, i32) {
    %c0_i32 = arith.constant 0 : i32
    %c0_i32_0 = arith.constant 0 : i32
    %c0_i32_1 = arith.constant 0 : i32
    return %c0_i32, %c0_i32_0 : i32, i32
  }
  func.func @transform_4(%arg0: i32, %arg1: memref<2xf32, #tpu.memory_space<smem>>) -> (i32, i32) {
    %c0_i32 = arith.constant 0 : i32
    %c0_i32_0 = arith.constant 0 : i32
    %c0_i32_1 = arith.constant 0 : i32
    return %c0_i32, %c0_i32_0 : i32, i32
  }
  func.func @transform_5(%arg0: i32, %arg1: memref<2xf32, #tpu.memory_space<smem>>) -> (i32, i32) {
    %c0_i32 = arith.constant 0 : i32
    %c0_i32_0 = arith.constant 0 : i32
    return %arg0, %c0_i32 : i32, i32
  }
  func.func @transform_6(%arg0: i32, %arg1: memref<2xf32, #tpu.memory_space<smem>>) -> (i32, i32) {
    %c0_i32 = arith.constant 0 : i32
    %c0_i32_0 = arith.constant 0 : i32
    return %arg0, %c0_i32 : i32, i32
  }
  func.func @transform_7(%arg0: i32, %arg1: memref<2xf32, #tpu.memory_space<smem>>) -> (i32, i32, i32) {
    %c0_i32 = arith.constant 0 : i32
    %c0_i32_0 = arith.constant 0 : i32
    %c0_i32_1 = arith.constant 0 : i32
    return %arg0, %c0_i32, %c0_i32_0 : i32, i32, i32
  }
}

</mosaic_0001>

<bundles_post_ra>
// kernel: tpu_custom_call.1
= control target key start
LH: loop header
LB: loop body
LE: loop exit
PB: predicated region body
PF: predicated region fallthrough
CT: control target
= control target key end

     0   :  { %s425_s0 = inlined_call_operand.hbm [shape: f32[2], index: 0, kind: input, shape index: {}]   ;;  %s426_s1 = inlined_call_operand.vmem [shape: f32[2,32], index: 1, kind: input, shape index: {}]   ;;  %s427_s2 = inlined_call_operand.hbm [shape: f32[2,8,32], index: 2, kind: input, shape index: {}]   ;;  %s428_s3 = inlined_call_operand.vmem [shape: f32[2,8], index: 3, kind: input, shape index: {}]   ;;  %s429_s4 = inlined_call_operand.vmem [shape: f32[1,32], index: 4, kind: input, shape index: {}]   ;;  %s430_s5 = inlined_call_operand.vmem [shape: f32[1,32], index: 5, kind: input, shape index: {}]   ;;  %s431_s6 = inlined_call_operand.hbm [shape: f32[2,8], index: 6, kind: output, shape index: {0}]   ;;  %s432_s7 = inlined_call_operand.hbm [shape: f32[2,8], index: 7, kind: output, shape index: {1}]   ;;  %s433_s8 = inlined_call_operand.hbm [shape: f32[1,1,1], index: 8, kind: output, shape index: {2}]  }
   0x1   :  { %s190_s29 = scalar_lea.hbm %s425_s0, 16 }
   0x2   :  { %p191_p0 = scmp.ne.s32.totalorder %s425_s0, %s190_s29  ;;  %p194_p1 = scmp.lt.u32.totalorder %s190_s29, %s425_s0 }
   0x4   :  { %p196_p2 = pnand %p194_p1, %p191_p0 }
   0x6   :  { %199 = shalt.err (!%p196_p2)  }
   0x7   :  { %s296_s12 = smov [#allocation3]  }
   0x8   :  { %15 = dma.hbm_to_smem %s425_s0, 16, %s296_s12, [#allocation2] }
   0x9   :  { %288 = dma.done.wait [#allocation2], 16 }
   0xa   :  { %289 = vsyncadd [#allocation2], 4294967280 }
   0xb   :  { %17 = sfence }
   0xc   :  { %18 = vsyncpa [#allocation5], 0 }
   0xd   :  { %19 = vsyncpa [#allocation6], 0 }
   0xe   :  { %20 = vsyncpa [#allocation9], 0  ;;  %s297_s15 = smov [#allocation4]   ;;  %s200_s19 = scalar_lea.hbm %s427_s2, 256 }
   0xf   :  { %s28_s16 = sshll.u32 %s297_s15, 4  ;;  %p201_p3 = scmp.ne.s32.totalorder %s427_s2, %s200_s19  ;;  %s29_s16 = int_to_ptr.vmem [resolvable:$true] %s28_s16 }
  0x10   :  { %p204_p4 = scmp.lt.u32.totalorder %s200_s19, %s427_s2 }
  0x12   :  { %p206_p5 = pnand %p204_p4, %p201_p3 }
  0x14   :  { %209 = shalt.err (!%p206_p5)
}
  0x15   :  { %s210_s0 = scalar_lea.vmem %s29_s16, 256  ;;  %p215_p7 = scmp.lt.s32.totalorder %s29_s16, %s29_s16 }
  0x16   :  { %p211_p6 = scmp.ne.s32.totalorder %s29_s16, %s210_s0  ;;  %p216_p8 = scmp.lt.s32.totalorder %s210_s0, %s210_s0 }
  0x18   :  { %p217_p9 = por %p216_p8, %p215_p7 }
  0x1a   :  { %p218_p10 = pnand %p217_p9, %p211_p6 }
  0x1c   :  { %221 = shalt.err (!%p218_p10)
}
  0x1d   :  { %s298_s24 = smov 128   ;;  %s299_s25 = smov 8  }
  0x1e   :  { %34 = dma.hbm_to_vmem [thread:$0]  %s427_s2, 256, %s29_s16, [#allocation5], %s298_s24, %s298_s24, %s299_s25  }
  0x1f   :  { %290 = dma.done.wait [#allocation5], 256  }
  0x20   :  { %291 = vsyncadd [#allocation5], 4294967040  ;;  %v174_v0 = vld [vmem:[%s430_s5] ss:$0 sm:$0xff]  ;;  %v50_v1 = vld [vmem:[#allocation4] sm:$0xff]  ;;  %vm73_vm0 = vcmask 261120   ;;  %v85_v11 = vlaneseq }
  0x21   :  { %v51_v2 = vld [vmem:[#allocation4 + $0x8] sm:$0xff]  ;;  %v71_v3 = vmul.f32 %v174_v0, %v50_v1  ;;  %v46_v5 = vld [vmem:[%s426_s1] sm:$0x3]  ;;  %vm59_vm1 = vcmask 254976   ;;  %s172_s2 = sld [smem:[#allocation3 + $0x1]]  ;;  %s44_s5 = sld [smem:[#allocation3]] }
  0x22   :  { %v72_v4 = vmul.f32 %v174_v0, %v51_v2  ;;  %v173_v6 = vld [vmem:[%s429_s4] ss:$0 sm:$0xff]  ;;  %v86_v12 = vand.u32 127, %v85_v11  ;;  %v88_v13 = vshrl.u32 %v85_v11, 7  ;;  %vm95_vm2 = vcmask 1041409   ;;  %s301_s13 = smov [#allocation7]  }
  0x23   :  { %v58_v7 = vmul.f32 %v173_v6, %v46_v5  ;;  %v74_v8 = vsel %vm73_vm0, %v71_v3, 0.0  ;;  %v49_v25 = vld [vmem:[%s428_s3] sm:$0x3]  ;;  %vm101_vm3 = vcmask 58368   ;;  %s300_s3 = smov [#allocation8]   ;;  %s136_s14 = sshll.u32 %s301_s13, 4  ;;  %s137_s14 = int_to_ptr.vmem [resolvable:$true] %s136_s14 }
  0x24   :  { %75 = vadd.xlane.f32.xlu0 %v74_v8  ;;  %v77_v10 = vsel %vm73_vm0, %v72_v4, 0.0  ;;  %v89_v16 = vsub.s32 %v86_v12, %v88_v13  ;;  %s146_s12 = sshll.u32 %s300_s3, 4  ;;  %s147_s12 = int_to_ptr.vmem [resolvable:$true] %s146_s12 }
  0x25   :  { %v60_v9 = vsel %vm59_vm1, %v58_v7, 0.0  ;;  %s222_s15 = scalar_lea.vmem %s147_s12, 32  ;;  %p227_p12 = scmp.lt.s32.totalorder %s147_s12, %s147_s12 }
  0x26   :  { %61 = vadd.xlane.f32.xlu1 %v60_v9  ;;  %p223_p11 = scmp.ne.s32.totalorder %s147_s12, %s222_s15  ;;  %p228_p13 = scmp.lt.s32.totalorder %s222_s15, %s222_s15 }
  0x27   :  { %v80_v15 = vstv %s172_s2  ;;  %v63_v19 = vstv %s44_s5 }
  0x28   :  { %78 = vadd.xlane.f32.xlu0 %v77_v10  ;;  %p229_p0 = por %p228_p13, %p227_p12 }
  0x2a   :  { %p230_p1 = pnand %p229_p0, %p223_p11 }
  0xb1   :  { %v76_v14 = vpop.xlane.xlu0 %75 }
  0xb2   :  { %v81_v17 = vadd.f32 %v80_v15, %v76_v14 }
  0xb3   :  { %v62_v18 = vpop.xlane.xlu1 %61 }
  0xb4   :  { %v64_v22 = vadd.f32 %v63_v19, %v62_v18  ;;  %v90_v23 = vrot.slane %v81_v17, %v89_v16 }
  0xb5   :  { %v79_v20 = vpop.xlane.xlu0 %78 }
  0xb6   :  { %v82_v21 = vadd.f32 %v80_v15, %v79_v20 }
  0xb8   :  { %v94_v24 = vrot.slane %v82_v21, %v89_v16 }
  0xba   :  { %v96_v26 = vsel %vm95_vm2, %v94_v24, %v90_v23 }
  0xbb   :  { %v98_v27 = vadd.f32 %v96_v26, %v64_v22 }
  0xbd   :  { %v99_v28 = vadd.f32 %v98_v27, %v49_v25 }
  0xbf   :  { %184 = vtanh.f32 %v99_v28 }
  0xc9   :  { %v185_v29 = vpop.eup %184 }
  0xca   :  { %v102_v30 = vsel %vm101_vm3, %v185_v29, -inf }
  0xcb   :  { %103 = vmax.xlane.f32.xlu1 %v102_v30 }
 0x158   :  { %v104_v31 = vpop.xlane.xlu1 %103 }
 0x159   :  { %v105_v32 = vsub.f32 %v185_v29, %v104_v31 }
 0x15b   :  { %v106_v33 = vmul.f32 1.442695, %v105_v32 }
 0x15d   :  { %186 = vpow2.f32 %v106_v33 }
 0x167   :  { %v187_v34 = vpop.eup %186 }
 0x168   :  { %v108_v35 = vsel %vm101_vm3, %v187_v34, 0.0 }
 0x169   :  { %109 = vadd.xlane.f32.xlu0 %v108_v35 }
 0x1f6   :  { %v110_v36 = vpop.xlane.xlu0 %109 }
 0x1f7   :  { %188 = vrcp.f32 %v110_v36 }
 0x201   :  { %v189_v37 = vpop.eup %188 }
 0x202   :  { %v112_v38 = vmul.f32 %v189_v37, %v187_v34 }
 0x204   :  { %v113_v39 = vadd.f32 %v112_v38, %v49_v25  ;;  %114 = vst.msk [vmem:[#allocation7] sm:$0x3] %vm101_vm3, %v112_v38 }
 0x206   :  { %v116_v40 = vmin.f32 %v112_v38, %v113_v39  ;;  %115 = vst.msk [vmem:[#allocation8] sm:$0x3] %vm101_vm3, %v113_v39 }
 0x208   :  { %v117_v41 = vsel %vm101_vm3, %v116_v40, 0.0 }
 0x209   :  { %118 = vadd.xlane.f32.xlu1 %v117_v41 }
 0x20a   :  { %233 = shalt.err (!%p230_p1)
}
 0x20b   :  { %s234_s18 = scalar_lea.hbm %s432_s7, 32 }
 0x20c   :  { %p235_p2 = scmp.ne.s32.totalorder %s432_s7, %s234_s18  ;;  %p238_p3 = scmp.lt.u32.totalorder %s234_s18, %s432_s7 }
 0x20e   :  { %p240_p4 = pnand %p238_p3, %p235_p2 }
 0x210   :  { %243 = shalt.err (!%p240_p4)
}
 0x211   :  { %149 = dma.vmem_to_hbm [thread:$0]  %s147_s12, 32, %s432_s7, [#allocation9]  }
 0x212   :  { %s244_s24 = scalar_lea.vmem %s137_s14, 32  ;;  %p249_p6 = scmp.lt.s32.totalorder %s137_s14, %s137_s14 }
 0x213   :  { %p245_p5 = scmp.ne.s32.totalorder %s137_s14, %s244_s24  ;;  %p250_p7 = scmp.lt.s32.totalorder %s244_s24, %s244_s24 }
 0x215   :  { %p251_p8 = por %p250_p7, %p249_p6 }
 0x217   :  { %p252_p9 = pnand %p251_p8, %p245_p5 }
 0x219   :  { %255 = shalt.err (!%p252_p9)
}
 0x21a   :  { %s256_s27 = scalar_lea.hbm %s431_s6, 32 }
 0x21b   :  { %p257_p10 = scmp.ne.s32.totalorder %s431_s6, %s256_s27  ;;  %p260_p11 = scmp.lt.u32.totalorder %s256_s27, %s431_s6 }
 0x21d   :  { %p262_p12 = pnand %p260_p11, %p257_p10 }
 0x21f   :  { %265 = shalt.err (!%p262_p12)
}
 0x220   :  { %139 = dma.vmem_to_hbm [thread:$0]  %s137_s14, 32, %s431_s6, [#allocation6]   ;;  %vm128_vm4 = vcmask 0  }
 0x221   :  { %s302_s11 = smov [#allocation10]  }
 0x222   :  { %s156_s2 = sshll.u32 %s302_s11, 4  ;;  %s157_s2 = int_to_ptr.vmem [resolvable:$true] %s156_s2 }
 0x223   :  { %s266_s1 = scalar_lea.vmem %s157_s2, 16  ;;  %s270_s4 = scalar_lea.vmem %s157_s2, 32 }
 0x224   :  { %p267_p13 = scmp.ne.s32.totalorder %s157_s2, %s266_s1  ;;  %p271_p0 = scmp.lt.s32.totalorder %s157_s2, %s157_s2 }
 0x225   :  { %p272_p1 = scmp.lt.s32.totalorder %s270_s4, %s266_s1 }
 0x227   :  { %p273_p2 = por %p272_p1, %p271_p0 }
 0x229   :  { %p274_p3 = pnand %p273_p2, %p267_p13 }
 0x296   :  { %v119_v42 = vpop.xlane.xlu1 %118 }
 0x297   :  { %v120_v43 = vrot.slane %v119_v42, 4 }
 0x299   :  { %v121_v44 = vadd.f32 %v120_v43, %v119_v42 }
 0x29b   :  { %v122_v45 = vrot.slane %v121_v44, 2 }
 0x29d   :  { %v123_v46 = vadd.f32 %v122_v45, %v121_v44 }
 0x29f   :  { %v124_v47 = vrot.slane %v123_v46, 1 }
 0x2a1   :  { %v125_v48 = vadd.f32 %v124_v47, %v123_v46 }
 0x2a3   :  { %175 = vpush %v125_v48 }
 0x2d4   :  { %s176_s5 = spop %175 }
 0x2d5   :  { %v127_v49 = vstv %s176_s5 }
 0x2d6   :  { %129 = vst.msk [vmem:[#allocation10] sm:$0x1] %vm128_vm4, %v127_v49 }
 0x2d7   :  { %277 = shalt.err (!%p274_p3)
}
 0x2d8   :  { %s278_s12 = scalar_lea.hbm %s433_s8, 16 }
 0x2d9   :  { %p279_p4 = scmp.ne.s32.totalorder %s433_s8, %s278_s12  ;;  %p282_p5 = scmp.lt.u32.totalorder %s278_s12, %s433_s8 }
 0x2db   :  { %p284_p6 = pnand %p282_p5, %p279_p4 }
 0x2dd   :  { %287 = shalt.err (!%p284_p6)
}
 0x2de   :  { %159 = dma.vmem_to_hbm [thread:$0]  %s157_s2, 16, %s433_s8, [#allocation9]  }
 0x2df   :  { %292 = dma.done.wait [#allocation6], 32  }
 0x2e0   :  { %293 = vsyncadd [#allocation6], 4294967264 }
 0x2e1   :  { %294 = dma.done.wait [#allocation9], 48  }
 0x2e2   :  { %295 = vsyncadd [#allocation9], 4294967248 }
 0x2e3   :  { %169 = vsyncpa [#allocation5], 1 }
 0x2e4   :  { %170 = vsyncpa [#allocation6], 1 }
 0x2e5   :  { %171 = vsyncpa [#allocation9], 1 }

</bundles_post_ra>
